<compile_context>
chip_gen: v5e
topology: v5e:2x2
jax: 0.10.0
libtpu: 0.0.40
codegen_flags: <defaults>
</compile_context>

<pallas_src>
import jax
import jax.numpy as jnp
import numpy as np
from jax.experimental import pallas as pl
from jax.experimental.pallas import tpu as pltpu


def _round_up(x, m):
    return ((x + m - 1) // m) * m


def _polar_linear_kernel(z_ref, w_ref, b_ref, o_ref):
    """One (tm, tn) output tile.

    z_ref : (2, tm, n_pairs) f32   [0] = radius lanes, [1] = angle lanes
    w_ref : (2*n_pairs, tn)        concat of even / odd loading rows
    b_ref : (1, tn)          f32
    o_ref : (tm, tn)         out dtype
    """
    r = z_ref[0]
    th = z_ref[1]
    # EUP: exactly one cos + one sin pass over half-width (tm, n_pairs) operands.
    rc = r * jnp.cos(th)
    rs = r * jnp.sin(th)
    # Single K = 2*n_pairs MXU matmul (f32 accumulation).
    x = jnp.concatenate([rc, rs], axis=-1)
    acc = jnp.dot(x.astype(w_ref.dtype), w_ref[...],
                  preferred_element_type=jnp.float32)
    o_ref[...] = (acc + b_ref[...]).astype(o_ref.dtype)


def linear_polar_to_cartesian(z_polar, loading, bias, n_pairs, *,
                              tm=512, tn=512,
                              matmul_dtype=jnp.float32,
                              out_dtype=jnp.float32):
    """z_polar: (B, T, dim_in); loading: (dim_in, dim_out); bias: (dim_out,).

    tm: row tile (multiple of 8).  tn: output-column tile (multiple of 128).
    Same large tiles work on v5e/v6e/v7x (kernel is HBM/output-write bound).
    matmul_dtype: dtype fed to the MXU; bf16 is recommended on v6e/v7x, keep
      f32 on v5e and whenever bit-exact agreement with the module is required.
    out_dtype: f32 matches the module; bf16 (opt-in) halves output HBM traffic.
    """
    B, T, d_in = z_polar.shape
    d_out = loading.shape[1]
    assert n_pairs >= 1 and 2 * n_pairs <= d_in
    assert tm % 8 == 0 and tn % 128 == 0
    M = B * T

    # --- wrapper-side layout plumbing (one pass over z_polar) ----------------
    z2 = z_polar.reshape(M, d_in).astype(jnp.float32)
    pairs = z2[:, :2 * n_pairs].reshape(M, n_pairs, 2)
    rt = jnp.moveaxis(pairs, 2, 0)                       # (2, M, n_pairs)
    w_cat = jnp.concatenate(
        [loading[0:2 * n_pairs:2, :], loading[1:2 * n_pairs:2, :]],
        axis=0).astype(matmul_dtype)                     # (2*n_pairs, d_out)
    b2 = bias.reshape(1, d_out).astype(jnp.float32)

    # --- row tiling: large, but keep >= 2 blocks for the 2-TC (v7x) case -----
    if M > 8:
        tm_eff = min(tm, _round_up(-(-M // 2), 8))
    else:
        tm_eff = 8
    M_pad = _round_up(M, tm_eff)
    if M_pad != M:
        rt = jnp.pad(rt, ((0, 0), (0, M_pad - M), (0, 0)))

    # --- output-column tiling: always lane-dense (multiple of 128) -----------
    if d_out <= tn:
        tn_eff = _round_up(d_out, 128)
        d_out_pad = tn_eff
    else:
        tn_eff = tn
        d_out_pad = _round_up(d_out, tn_eff)
    if d_out_pad != d_out:
        padc = d_out_pad - d_out
        w_cat = jnp.pad(w_cat, ((0, 0), (0, padc)))
        b2 = jnp.pad(b2, ((0, 0), (0, padc)))

    grid = (M_pad // tm_eff, d_out_pad // tn_eff)

    out = pl.pallas_call(
        _polar_linear_kernel,
        out_shape=jax.ShapeDtypeStruct((M_pad, d_out_pad), out_dtype),
        grid_spec=pltpu.PrefetchScalarGridSpec(
            num_scalar_prefetch=0,
            grid=grid,
            in_specs=[
                pl.BlockSpec((2, tm_eff, n_pairs), lambda i, j: (0, i, 0)),
                pl.BlockSpec((2 * n_pairs, tn_eff), lambda i, j: (0, j)),
                pl.BlockSpec((1, tn_eff), lambda i, j: (0, j)),
            ],
            out_specs=pl.BlockSpec((tm_eff, tn_eff), lambda i, j: (i, j)),
        ),
        compiler_params=pltpu.CompilerParams(
            # Footprint at tm=512/tn=512 is ~3 MiB double-buffered: well under
            # every generation's scoped VMEM default, so no explicit cap.
            dimension_semantics=("parallel", "parallel"),
        ),
    )(rt, w_cat, b2)

    return out[:M, :d_out].reshape(B, T, d_out)


def _reference_forward(z_polar, loading, bias, n_pairs):
    """Pure-JAX reference mirroring the PyTorch module exactly."""
    z_cart = jnp.zeros_like(z_polar)
    for i in range(n_pairs):
        rr = z_polar[:, :, 2 * i]
        th = z_polar[:, :, 2 * i + 1]
        z_cart = z_cart.at[:, :, 2 * i].set(rr * jnp.cos(th))
        z_cart = z_cart.at[:, :, 2 * i + 1].set(rr * jnp.sin(th))
    return z_cart @ loading + bias


if __name__ == "__main__":
    key = jax.random.PRNGKey(0)

    # Case 1: small module-like shapes (d_out=16 exercises the lane-padded
    # small-output path; M=16 exercises the >=2-row-block clamp).
    B, T, dim_in, dim_out, n_pairs = 2, 8, 8, 16, 3
    k_z, k_w, k_b, key = jax.random.split(key, 4)
    z_polar = jax.random.normal(k_z, (B, T, dim_in), dtype=jnp.float32)
    loading = jax.random.normal(k_w, (dim_in, dim_out), dtype=jnp.float32) * 0.1
    bias = jax.random.normal(k_b, (dim_out,), dtype=jnp.float32) * 0.1

    out = jax.block_until_ready(
        linear_polar_to_cartesian(z_polar, loading, bias, n_pairs))
    ref = _reference_forward(z_polar, loading, bias, n_pairs)
    np.testing.assert_allclose(np.asarray(out), np.asarray(ref),
                               rtol=1e-5, atol=1e-5)
    assert out.shape == (B, T, dim_out) and out.dtype == jnp.float32

    # Case 2: exercises row padding (M=18) and multi-block column tiling
    # (d_out=640 -> two 512/128 column blocks with padding).
    B2, T2, di2, do2, np2 = 2, 9, 8, 640, 3
    k_z, k_w, k_b, key = jax.random.split(key, 4)
    z2 = jax.random.normal(k_z, (B2, T2, di2), dtype=jnp.float32)
    w2 = jax.random.normal(k_w, (di2, do2), dtype=jnp.float32) * 0.1
    b2 = jax.random.normal(k_b, (do2,), dtype=jnp.float32) * 0.1

    out2 = jax.block_until_ready(
        linear_polar_to_cartesian(z2, w2, b2, np2, tm=512, tn=512))
    ref2 = _reference_forward(z2, w2, b2, np2)
    np.testing.assert_allclose(np.asarray(out2), np.asarray(ref2),
                               rtol=1e-5, atol=1e-5)
    assert out2.shape == (B2, T2, do2)

    # Case 3: opt-in bf16 MXU operands (v6e/v7x fast path); looser tolerance
    # since operands are rounded to bf16 (f32 accumulation, K = 2*n_pairs).
    out3 = jax.block_until_ready(
        linear_polar_to_cartesian(z2, w2, b2, np2,
                                  matmul_dtype=jnp.bfloat16))
    np.testing.assert_allclose(np.asarray(out3), np.asarray(ref2),
                               rtol=2e-2, atol=2e-2)

    print("KERNEL_OK")
</pallas_src>

<mosaic_0001>
module attributes {stable_mosaic.version = 11 : i64} {
  func.func @_polar_linear_kernel(%arg0: i32, %arg1: i32, %arg2: memref<2x8x3xf32, #tpu.memory_space<vmem>>, %arg3: memref<6x128xf32, #tpu.memory_space<vmem>>, %arg4: memref<1x128xf32, #tpu.memory_space<vmem>>, %arg5: memref<8x128xf32, #tpu.memory_space<vmem>>) attributes {dimension_semantics = [#tpu.dimension_semantics<parallel>, #tpu.dimension_semantics<parallel>], iteration_bounds = array<i64: 2, 1>, scalar_prefetch = 0 : i64, scratch_operands = 0 : i64, tpu.core_type = #tpu.core_type<tc>, window_params = [{transform_indices = @transform_0, window_bounds = array<i64: 2, 8, 3>}, {transform_indices = @transform_1, window_bounds = array<i64: 6, 128>}, {transform_indices = @transform_2, window_bounds = array<i64: 1, 128>}, {transform_indices = @transform_3, window_bounds = array<i64: 8, 128>}]} {
    %c0 = arith.constant 0 : index
    %c0_0 = arith.constant 0 : index
    %c0_1 = arith.constant 0 : index
    %0 = vector.load %arg2[%c0, %c0_0, %c0_1] : memref<2x8x3xf32, #tpu.memory_space<vmem>>, vector<1x8x3xf32>
    %1 = vector.shape_cast %0 : vector<1x8x3xf32> to vector<8x3xf32>
    %c1 = arith.constant 1 : index
    %c0_2 = arith.constant 0 : index
    %c0_3 = arith.constant 0 : index
    %2 = vector.load %arg2[%c1, %c0_2, %c0_3] : memref<2x8x3xf32, #tpu.memory_space<vmem>>, vector<1x8x3xf32>
    %3 = vector.shape_cast %2 : vector<1x8x3xf32> to vector<8x3xf32>
    %4 = math.cos %3 : vector<8x3xf32>
    %5 = arith.mulf %1, %4 : vector<8x3xf32>
    %6 = math.sin %3 : vector<8x3xf32>
    %7 = arith.mulf %1, %6 : vector<8x3xf32>
    %8 = tpu.concatenate %5, %7 in 1 : vector<8x3xf32>, vector<8x3xf32> -> vector<8x6xf32>
    %c0_4 = arith.constant 0 : index
    %c0_5 = arith.constant 0 : index
    %9 = vector.load %arg3[%c0_4, %c0_5] : memref<6x128xf32, #tpu.memory_space<vmem>>, vector<6x128xf32>
    %cst = arith.constant dense<0.000000e+00> : vector<8x128xf32>
    %10 = tpu.matmul %8, %9, %cst {dimension_numbers = #tpu.dot_dimension_numbers<[1], [0], [0], [1], [0, 0, 1, 1], [], []>} : vector<8x6xf32>, vector<6x128xf32>, vector<8x128xf32> -> vector<8x128xf32>
    %c0_6 = arith.constant 0 : index
    %c0_7 = arith.constant 0 : index
    %11 = vector.load %arg4[%c0_6, %c0_7] : memref<1x128xf32, #tpu.memory_space<vmem>>, vector<1x128xf32>
    %12 = vector.broadcast %11 : vector<1x128xf32> to vector<8x128xf32>
    %13 = arith.addf %10, %12 : vector<8x128xf32>
    %c0_8 = arith.constant 0 : index
    %c0_9 = arith.constant 0 : index
    %14 = vector.load %arg5[%c0_8, %c0_9] : memref<8x128xf32, #tpu.memory_space<vmem>>, vector<8x128xf32>
    tpu.vector_store %arg5[%c0_8, %c0_9], %13 {strides = array<i32>} : memref<8x128xf32, #tpu.memory_space<vmem>>, vector<8x128xf32>,
    return
  }
  func.func @transform_0(%arg0: i32, %arg1: i32) -> (i32, i32, i32) {
    %c0_i32 = arith.constant 0 : i32
    %c0_i32_0 = arith.constant 0 : i32
    %c0_i32_1 = arith.constant 0 : i32
    return %c0_i32, %arg0, %c0_i32_0 : i32, i32, i32
  }
  func.func @transform_1(%arg0: i32, %arg1: i32) -> (i32, i32) {
    %c0_i32 = arith.constant 0 : i32
    %c0_i32_0 = arith.constant 0 : i32
    return %c0_i32, %arg1 : i32, i32
  }
  func.func @transform_2(%arg0: i32, %arg1: i32) -> (i32, i32) {
    %c0_i32 = arith.constant 0 : i32
    %c0_i32_0 = arith.constant 0 : i32
    return %c0_i32, %arg1 : i32, i32
  }
  func.func @transform_3(%arg0: i32, %arg1: i32) -> (i32, i32) {
    %c0_i32 = arith.constant 0 : i32
    return %arg0, %arg1 : i32, i32
  }
}

</mosaic_0001>

<bundles_post_ra>
// kernel: tpu_custom_call.1
= control target key start
LH: loop header
LB: loop body
LE: loop exit
PB: predicated region body
PF: predicated region fallthrough
CT: control target
= control target key end

     0   :  { %8 = vsyncpa [#allocation4], 0  ;;  %s1084_s0 = inlined_call_operand.vmem [shape: f32[2,16,3], index: 0, kind: input, shape index: {}]   ;;  %s1085_s1 = inlined_call_operand.vmem [shape: f32[6,128], index: 1, kind: input, shape index: {}]   ;;  %s1086_s2 = inlined_call_operand.vmem [shape: f32[1,128], index: 2, kind: input, shape index: {}]   ;;  %s1087_s3 = inlined_call_operand.hbm [shape: f32[16,128], index: 3, kind: output, shape index: {}]  }
   0x1   :  { %10 = vsyncpa [#allocation4 + $0x1], 0  ;;  %s921_s12 = smov 0   ;;  %s923_s13 = smov 0  }
   0x2   :  { %s925_s14 = smov 0   ;;  %s927_s15 = smov 0  }
   0x3   :  { %s929_s16 = smov 0   ;;  %s931_s17 = smov 0  }
   0x4 LB: > { %s725_s18 = sadd.s32 4294967295, %s891_s17   ;;  %s726_s19 = sadd.s32 4294967294, %s891_s17   ;;  %s891_s17 = sphi %s931_s17, %s16_s17   ;;  %s887_s16 = sphi %s929_s16, %s1094_s16   ;;  %s883_s15 = sphi %s927_s15, %s1093_s15   ;;  %s879_s14 = sphi %s925_s14, %s1092_s14   ;;  %s875_s13 = sphi %s923_s13, %s1091_s13   ;;  %s871_s12 = sphi %s921_s12, %s1090_s12  }
   0x5   : > { %s28_s20 = sadd.s32 1, %s887_s16  ;;  %s35_s21 = sadd.s32 1, %s879_s14 }
   0x6   : > { %p30_p0 = scmp.ge.s32.totalorder %s28_s20, 2  ;;  %p42_p1 = scmp.ne.s32.totalorder %s879_s14, %s875_s13 }
   0x7   : > { %p43_p2 = scmp.eq.s32.totalorder %s891_s17, 0  ;;  %p126_p3 = scmp.eq.s32.totalorder %s725_s18, 1 }
   0x8   : > { %s1096_s20 = smov (%p30_p0, %s28_s20), 0  ;;  %p131_p6 = scmp.ne.s32.totalorder %s875_s13, %s871_s12 }
   0x9   : > { %p44_p4 = por %p43_p2, %p42_p1  ;;  %p960_p5 = por %p126_p3, %p42_p1 }
   0xa   : > { %s32_s23 = ssub.s32 %s887_s16, %s1096_s20  ;;  %p132_p8 = scmp.eq.s32.totalorder %s726_s19, 1 }
   0xb   : > { %p33_p7 = scmp.eq.s32.totalorder %s32_s23, 0  ;;  %p730_p10 = scmp.ge.s32.totalorder %s891_s17, 2 }
   0xc   : > { %p971_p9 = por %p132_p8, %p131_p6 }
   0xd   : > { %s969_s24 = scalar_select %p33_p7, %s879_s14, %s35_s21  }
   0xe   : > { %161 = sbr.rel (%p730_p10) target bundleno = 25 (0x19), region = 24 }
  0x13   : > { %164 = sbr.rel (!%p44_p4) target bundleno = 25 (0x19), region = 28  ;;  %s166_s26 = sand.u32 (%p44_p4), 1, %s879_s14  }
  0x14   : > { %s732_s27 = sshll.u32 (%p44_p4), %s887_s16, 3  ;;  %s731_s28 = sshll.u32 (%p44_p4), %s166_s26, 4 }
  0x15   : > { %s170_s4 = scalar_lea.vmem (%p44_p4), %s1084_s0, %s732_s27  ;;  %s168_s5 = scalar_lea.vmem (%p44_p4), [#allocation2], %s731_s28 }
  0x16   : > { %v201_v0 = vld [vmem:[%s170_s4] sm:$0xff] (%p44_p4)  ;;  %v203_v1 = vld [vmem:[%s170_s4 + $0x10] sm:$0xff] (%p44_p4) }
  0x17   : > { %202 = vst [vmem:[%s168_s5] sm:$0xff] (%p44_p4), %v201_v0 }
  0x18   : > { %204 = vst [vmem:[%s168_s5 + $0x8] sm:$0xff] %v203_v1 }
  0x19 PF: > { %p733_p11 = scmp.ge.s32.totalorder %s891_s17, 1  ;;  %p209_p12 = scmp.lt.s32.totalorder %s891_s17, 3 }
  0x1b   : > { %p210_p13 = pnand %p733_p11, %p209_p12 }
  0x1c   : > { %s986_s6 = sand.u32 (!%p210_p13), 1, %s875_s13   ;;  %s900_s9 = smov (!%p210_p13), 3  }
  0x1d   : > { %213 = sbr.rel (%p210_p13) target bundleno = 380 (0x17c), region = 66  ;;  %s734_s7 = sshll.u32 (!%p210_p13), %s986_s6, 4 }
  0x1e   : > { %s989_s8 = scalar_lea.vmem (!%p210_p13), [#allocation2], %s734_s7  ;;  %s735_s18 = sshll.u32 (!%p210_p13), %s986_s6, 3 }
  0x1f   : > { %s746_s19 = sshll.u32 (!%p210_p13), %s883_s15, 3  ;;  %s245_s29 = scalar_lea.vmem (!%p210_p13), [#allocation3], %s735_s18 }
  0x20   : > { %s619_s26 = scalar_lea.hbm (!%p210_p13), %s1087_s3, %s746_s19  ;;  %s621_s30 = sshll.u32 (!%p210_p13), %s245_s29, 4  ;;  %s622_s30 = int_to_ptr.vmem [resolvable:$true] %s621_s30 }
  0x21   : > { %s623_s4 = sshll.u32 (!%p210_p13), %s619_s26, 4  ;;  %s608_s5 = scalar_lea.sflag (!%p210_p13), [#allocation4], %s986_s6  ;;  %s624_s4 = int_to_ptr.hbm [resolvable:$true] %s623_s4 }
  0x22   : > { %v992_v2 = vld [vmem:[%s989_s8 + $0x8] sm:$0xff]  ;;  %v893_v14 = vmov 683565275   ;;  %v894_v16 = vmov 2475754826   ;;  %s827_s7 = sshra.s32 %s624_s4, 4  ;;  %s828_s7 = int_to_ptr.hbm [resolvable:$true] %s827_s7 }
  0x23   : > { %v259_v3 = vand.u32 2139095040, %v992_v2  ;;  %v256_v5 = vand.u32 2147483647, %v992_v2  ;;  %v895_v18 = vmov 2131351028   ;;  %vm258_vm12 = vcmp.lt.s32.totalorder %v992_v2, 0  ;;  %p834_p3 = scmp.lt.s32.totalorder %s828_s7, %s1087_s3 }
  0x24   : > { %v896_v20 = vmov 2102212464   ;;  %v897_v22 = vmov 920167782   ;;  %v898_v28 = vmov 1326507024  }
  0x25   : > { %v260_v4 = vshrl.u32 %v259_v3, 23  ;;  %v263_v8 = vand.u32 8388607, %v256_v5  ;;  %v899_v3 = vmov 0   ;;  %vm257_vm13 = vcmp.le.f32.partialorder %v256_v5, 0.7853982 }
  0x26   : > { %s829_s15 = scalar_lea.hbm %s828_s7, 8  ;;  %s833_s10 = scalar_lea.hbm %s1087_s3, 16 }
  0x27   : > { %v737_v6 = vadd.s32 4294967169, %v260_v4  ;;  %v264_v11 = vor.u32 8388608, %v263_v8  ;;  %p830_p0 = scmp.ne.s32.totalorder %s828_s7, %s829_s15  ;;  %p835_p4 = scmp.lt.s32.totalorder %s833_s10, %s829_s15 }
  0x29   : > { %v266_v7 = vadd.s32 1, %v737_v6  ;;  %v1001_v30 = vshll.u32 %v264_v11, 8  ;;  %p831_p1 = pnand %p830_p0, %p960_p5  ;;  %p836_p6 = por %p835_p4, %p834_p3 }
  0x2b   : > { %vm267_vm0 = vcmp.gt.s32.totalorder %v266_v7, 0  ;;  %v305_v42 = vand.u32 65535, %v1001_v30  ;;  %v306_v43 = vshrl.u32 %v1001_v30, 16  ;;  %p832_p2 = pneg %p831_p1 }
  0x2c   : > { %v268_v9 = vsel %vm267_vm0, %v266_v7, 0 }
  0x2d   : > { %v270_v10 = vand.u32 31, %v268_v9  ;;  %v998_v12 = vshrl.u32 %v268_v9, 5  ;;  %p837_p7 = pnand %p836_p6, %p832_p2 }
  0x2f   : > { %v271_v13 = vsub.s32 32, %v270_v10  ;;  %v273_v15 = vshll.u32 %v893_v14, %v270_v10  ;;  %v276_v17 = vshll.u32 %v894_v16, %v270_v10  ;;  %v279_v19 = vshll.u32 %v895_v18, %v270_v10 }
  0x30   : > { %v282_v21 = vshll.u32 %v896_v20, %v270_v10  ;;  %v285_v23 = vshll.u32 %v897_v22, %v270_v10  ;;  %vm288_vm1 = vcmp.lt.s32.totalorder %v998_v12, 1  ;;  %vm291_vm2 = vcmp.lt.s32.totalorder %v998_v12, 4 }
  0x31   : > { %v274_v24 = vshrl.u32 %v894_v16, %v271_v13  ;;  %v277_v25 = vshrl.u32 %v895_v18, %v271_v13  ;;  %v280_v26 = vshrl.u32 %v896_v20, %v271_v13  ;;  %v283_v27 = vshrl.u32 %v897_v22, %v271_v13 }
  0x32   : > { %v286_v29 = vshrl.u32 %v898_v28, %v271_v13  ;;  %vm290_vm3 = vcmp.lt.s32.totalorder %v998_v12, 3  ;;  %vm289_vm4 = vcmp.lt.s32.totalorder %v998_v12, 2  ;;  %v272_v50 = vshrl.u32 %v893_v14, %v271_v13 }
  0x33   : > { %v275_v31 = vor.u32 %v274_v24, %v273_v15  ;;  %v278_v32 = vor.u32 %v277_v25, %v276_v17  ;;  %v281_v33 = vor.u32 %v280_v26, %v279_v19  ;;  %v284_v34 = vor.u32 %v283_v27, %v282_v21 }
  0x34   : > { %v287_v35 = vor.u32 %v286_v29, %v285_v23 }
  0x35   : > { %v296_v36 = vsel %vm288_vm1, %v275_v31, %v278_v32  ;;  %v300_v37 = vsel %vm288_vm1, %v278_v32, %v281_v33  ;;  %v297_v38 = vsel %vm291_vm2, %v284_v34, 920167782  ;;  %v292_v63 = vsel %vm288_vm1, %v272_v50, %v275_v31 }
  0x36   : > { %v301_v39 = vsel %vm291_vm2, %v287_v35, 1326507024  ;;  %v298_v40 = vsel %vm290_vm3, %v281_v33, %v297_v38  ;;  %v293_v1 = vsel %vm291_vm2, %v281_v33, 2102212464 }
  0x37   : > { %v302_v41 = vsel %vm290_vm3, %v284_v34, %v301_v39  ;;  %v299_v44 = vsel %vm289_vm4, %v296_v36, %v298_v40  ;;  %v294_v14 = vsel %vm290_vm3, %v278_v32, %v293_v1 }
  0x38   : > { %v303_v45 = vsel %vm289_vm4, %v300_v37, %v302_v41  ;;  %v329_v48 = vand.u32 65535, %v299_v44  ;;  %v330_v49 = vshrl.u32 %v299_v44, 16  ;;  %v295_v22 = vsel %vm289_vm4, %v292_v63, %v294_v14 }
  0x39   : > { %v307_v46 = vand.u32 65535, %v303_v45  ;;  %v308_v47 = vshrl.u32 %v303_v45, 16  ;;  %v349_v26 = vmul.u32 %v1001_v30, %v295_v22  ;;  %vm399_vm4 = vweird.f32 %v992_v2 }
  0x3a   : > { %v331_v54 = vmul.u32 %v329_v48, %v305_v42  ;;  %v332_v55 = vmul.u32 %v330_v49, %v305_v42  ;;  %v333_v56 = vmul.u32 %v329_v48, %v306_v43  ;;  %v334_v60 = vmul.u32 %v330_v49, %v306_v43 }
  0x3b   : > { %v309_v51 = vmul.u32 %v307_v46, %v305_v42  ;;  %v310_v52 = vmul.u32 %v308_v47, %v305_v42  ;;  %v311_v53 = vmul.u32 %v307_v46, %v306_v43  ;;  %v312_v57 = vmul.u32 %v308_v47, %v306_v43 }
  0x3c   : > { %v335_v61 = vshll.u32 %v332_v55, 16  ;;  %v337_v62 = vshll.u32 %v333_v56, 16  ;;  %v336_v11 = vshrl.u32 %v332_v55, 16  ;;  %v338_v18 = vshrl.u32 %v333_v56, 16 }
  0x3d   : > { %v313_v58 = vshll.u32 %v310_v52, 16  ;;  %v315_v59 = vshll.u32 %v311_v53, 16  ;;  %v314_v7 = vshrl.u32 %v310_v52, 16  ;;  %v316_v15 = vshrl.u32 %v311_v53, 16 }
  0x3e   : > { %vm339_vm6 = vc.u32 %v331_v54, %v335_v61  ;;  %v341_v6 = vadd.s32 %v335_v61, %v331_v54 }
  0x3f   : > { %vm317_vm5 = vc.u32 %v309_v51, %v313_v58  ;;  %v319_v0 = vadd.s32 %v313_v58, %v309_v51  ;;  %v340_v9 = vsel %vm339_vm6, 1, %v899_v3  ;;  %vm571_vm6 = vcmask 23552  }
  0x40   : > { %v318_v4 = vsel %vm317_vm5, 1, %v899_v3  ;;  %v342_v13 = vadd.s32 %v340_v9, %v334_v60  ;;  %vm343_vm8 = vc.u32 %v341_v6, %v337_v62  ;;  %v345_v21 = vadd.s32 %v341_v6, %v337_v62 }
  0x41   : > { %v320_v8 = vadd.s32 %v318_v4, %v312_v57  ;;  %vm321_vm7 = vc.u32 %v319_v0, %v315_v59  ;;  %v344_v17 = vsel %vm343_vm8, 1, %v899_v3  ;;  %vm582_vm5 = vcmask 1045504  }
  0x42   : > { %v322_v10 = vsel %vm321_vm7, 1, %v899_v3  ;;  %v346_v19 = vadd.s32 %v344_v17, %v342_v13  ;;  %vm578_vm7 = vcmask 48128  }
  0x43   : > { %v324_v16 = vadd.s32 %v322_v10, %v320_v8 }
  0x44   : > { %v347_v23 = vadd.s32 %v346_v19, %v336_v11 }
  0x45   : > { %v325_v20 = vadd.s32 %v324_v16, %v314_v7 }
  0x46   : > { %v348_v25 = vadd.s32 %v347_v23, %v338_v18 }
  0x47   : > { %v326_v24 = vadd.s32 %v325_v20, %v316_v15  ;;  %v253_v15 = vld [vmem:[%s989_s8] sm:$0xff] }
  0x48   : > { %v352_v27 = vadd.s32 1, %v348_v25 }
  0x49   : > { %vm351_vm9 = vc.u32 %v326_v24, %v345_v21  ;;  %v350_v12 = vadd.s32 %v345_v21, %v326_v24  ;;  %v573_v24 = vld [vmem:[%s1085_s1] sm:$0x3f] }
  0x4a   : > { %v353_v28 = vsel %vm351_vm9, %v352_v27, %v348_v25  ;;  %743 = vmatpush.msk.msra.mxu0 %vm582_vm5, %v573_v24 }
  0x4b   : > { %v354_v29 = vadd.s32 %v353_v28, %v349_v26  ;;  %v812_v26 = vld [vmem:[%s1086_s2] ss:$0 sm:$0xff] }
  0x4d   : > { %v355_v31 = vadd.s32 536870912, %v354_v29 }
  0x4f   : > { %v356_v32 = vshrl.u32 %v355_v31, 30 }
  0x51   : > { %v357_v33 = vshll.u32 %v356_v32, 30  ;;  %v380_v50 = vsub.s32 4, %v356_v32 }
  0x53   : > { %v358_v34 = vsub.s32 %v354_v29, %v357_v33  ;;  %v381_v53 = vsel %vm258_vm12, %v380_v50, %v356_v32 }
  0x54   : > { %v383_v56 = vsel %vm257_vm13, 0, %v381_v53 }
  0x55   : > { %vm359_vm10 = vcmp.lt.s32.totalorder %v358_v34, 0  ;;  %v360_v35 = vsub.s32 0, %v358_v34  ;;  %v555_v61 = vadd.s32 3, %v383_v56  ;;  %v400_v3 = vand.u32 3, %v383_v56 }
  0x57   : > { %v361_v36 = vsel %vm359_vm10, %v360_v35, %v358_v34  ;;  %v556_v4 = vand.u32 3, %v555_v61  ;;  %vm405_vm14 = vcmp.eq.s32.totalorder %v400_v3, 2  ;;  %vm401_vm0 = vcmp.lt.s32.totalorder %v400_v3, 2 }
  0x58   : > { %v362_v37 = vclz %v361_v36  ;;  %vm402_vm1 = vcmp.eq.s32.totalorder %v400_v3, 0 }
  0x59   : > { %vm561_vm15 = vcmp.eq.s32.totalorder %v556_v4, 2  ;;  %vm558_vm2 = vcmp.eq.s32.totalorder %v556_v4, 0  ;;  %vm557_vm3 = vcmp.lt.s32.totalorder %v556_v4, 2 }
  0x5a   : > { %v738_v38 = vadd.s32 4294967294, %v362_v37 }
  0x5c   : > { %vm739_vm11 = vcmp.lt.s32.totalorder %v738_v38, 0 }
  0x5d   : > { %v365_v39 = vsel %vm739_vm11, 0, %v738_v38 }
  0x5e   : > { %v366_v40 = vsub.s32 32, %v365_v39  ;;  %v367_v41 = vshll.u32 %v358_v34, %v365_v39  ;;  %v370_v42 = vsub.s32 4294967266, %v365_v39 }
  0x60   : > { %v368_v30 = vshrl.u32 %v350_v12, %v366_v40  ;;  %v371_v43 = vadd.s32 127, %v370_v42 }
  0x62   : > { %v369_v44 = vor.u32 %v368_v30, %v367_v41  ;;  %v372_v45 = vshll.u32 %v371_v43, 23 }
  0x64   : > { %v373_v46 = vor.u32 4788187, %v372_v45  ;;  %v376_v47 = vcvt.s32.f32 %v369_v44 }
  0x66   : > { %v374_v48 = vand.u32 2147483647, %v373_v46 }
  0x68   : > { %v377_v49 = vmul.f32 %v376_v47, %v374_v48 }
  0x6a   : > { %v378_v51 = vxor.u32 2147483648, %v377_v49 }
  0x6c   : > { %v379_v52 = vsel %vm258_vm12, %v378_v51, %v377_v49 }
  0x6d   : > { %v382_v54 = vsel %vm257_vm13, %v992_v2, %v379_v52 }
  0x6e   : > { %v384_v55 = vmul.f32 %v382_v54, %v382_v54 }
  0x70   : > { %v385_v57 = vmul.f32 -0.001358992, %v384_v55  ;;  %v392_v58 = vmul.f32 -0.00019511016, %v384_v55 }
  0x72   : > { %v386_v59 = vadd.f32 0.041655596, %v385_v57  ;;  %v393_v60 = vadd.f32 0.008332121, %v392_v58 }
  0x74   : > { %v387_v62 = vmul.f32 %v386_v59, %v384_v55  ;;  %v394_v63 = vmul.f32 %v393_v60, %v384_v55 }
  0x76   : > { %v388_v0 = vadd.f32 -0.4999988, %v387_v62  ;;  %v395_v1 = vadd.f32 -0.16666654, %v394_v63 }
  0x78   : > { %v389_v6 = vmul.f32 %v388_v0, %v384_v55  ;;  %v396_v5 = vmul.f32 %v395_v1, %v384_v55 }
  0x7a   : > { %v390_v7 = vadd.f32 1.0, %v389_v6  ;;  %v397_v8 = vadd.f32 1.0, %v396_v5 }
  0x7c   : > { %v398_v9 = vmul.f32 %v397_v8, %v382_v54  ;;  %v406_v10 = vxor.u32 2147483648, %v390_v7 }
  0x7e   : > { %v403_v11 = vxor.u32 2147483648, %v398_v9  ;;  %v407_v13 = vsel %vm405_vm14, %v406_v10, %v398_v9  ;;  %v563_v14 = vsel %vm561_vm15, %v406_v10, %v398_v9 }
  0x80   : > { %v404_v16 = vsel %vm402_vm1, %v390_v7, %v403_v11  ;;  %v560_v17 = vsel %vm558_vm2, %v390_v7, %v403_v11 }
  0x81   : > { %v408_v18 = vsel %vm401_vm0, %v404_v16, %v407_v13  ;;  %v564_v19 = vsel %vm557_vm3, %v560_v17, %v563_v14 }
  0x82   : > { %v409_v20 = vsel %vm399_vm4, nan, %v408_v18  ;;  %v565_v21 = vsel %vm399_vm4, nan, %v564_v19 }
  0x83   : > { %v410_v22 = vmul.f32 %v409_v20, %v253_v15  ;;  %v566_v23 = vmul.f32 %v565_v21, %v253_v15 }
  0x85   : > { %568 = vrot.lane.b32.xlu0 %v566_v23, %s900_s9 }
  0xf7   : > { %v569_v2 = vpop.permute.xlu0 %568 }
  0xf8   : > { %v572_v25 = vsel %vm571_vm6, %v410_v22, %v569_v2 }
  0xf9   : > { %744 = vmatmul.msk.f32.vlgmr.msra.gmra.mxu0 %vm578_vm7, %v572_v25 }
 0x176   : > { %v603_v27 = vpop.f32.mrf.mxu0 }
 0x177   : > { %v604_v28 = vadd.f32 %v812_v26, %v603_v27 }
 0x179   : > { %606 = vst [vmem:[%s245_s29] sm:$0xff] %v604_v28 }
 0x17a   : > { %840 = shalt.err (!%p837_p7)
}
 0x17b   : > { %749 = dma.vmem_to_hbm [thread:$0]  (%p960_p5), %s622_s30, 128, %s624_s4, %s608_s5  }
 0x17c PF: > { %s635_s6 = sand.u32 1, %s871_s12   ;;  %p752_p8 = pnand %p730_p10, %p971_p9 }
 0x17d   : > { %s636_s19 = scalar_lea.sflag [#allocation4], %s635_s6 }
 0x17e   : > { %p753_p11 = pneg %p752_p8 }
 0x180   : > { %866 = dma.done.wait (%p753_p11), %s636_s19, 128  }
 0x181   : > { %868 = vsyncadd (%p753_p11), %s636_s19, 4294967168  ;;  %s16_s17 = sadd.s32 1, %s891_s17   ;;  %s1090_s12 = smov %s875_s13 }
 0x182   : > { %p13_p12 = scmp.ge.s32.totalorder %s16_s17, 4   ;;  %s1091_s13 = smov %s879_s14 }
 0x183   : > { %s1092_s14 = smov %s969_s24  ;;  %s1093_s15 = smov %s887_s16 }
 0x184   : > { %s1094_s16 = smov %s1096_s20  ;;  %15 = sbr.rel (!%p13_p12) target bundleno = 4 (0x4), region = 117 }
 0x189   :  { %642 = vsyncpa [#allocation4], 1 }
 0x18a   :  { %644 = vsyncpa [#allocation4 + $0x1], 1 }

</bundles_post_ra>
